<compile_context>
chip_gen: v6e
topology: v6e:2x2x1
jax: 0.10.0
libtpu: 0.0.40
codegen_flags: <defaults>
</compile_context>

<pallas_src>
import functools

import jax
import jax.numpy as jnp
from jax.experimental import pallas as pl
from jax.experimental.pallas import tpu as pltpu

LANE = 128


# ----------------------------------------------------------------------------
# Parameter initialization (mirrors Network.network_init: orthogonal weights,
# zero biases; LayerNorm gamma=1, beta=0, eps=1e-5).
# ----------------------------------------------------------------------------
def orthogonal(key, out_dim, in_dim, dtype=jnp.float32):
    """Deterministic orthogonal init (same spirit as nn.init.orthogonal_)."""
    rows, cols = out_dim, in_dim
    flat = jax.random.normal(key, (max(rows, cols), min(rows, cols)), dtype)
    q, r = jnp.linalg.qr(flat)
    q = q * jnp.sign(jnp.diag(r))  # sign correction -> unique decomposition
    if rows < cols:
        q = q.T
    return q[:rows, :cols].astype(dtype)


def init_network_params(key, layer_num, input_dim, output_dim, hidden_dim,
                        use_layernorm):
    layers_unit = [input_dim] + [hidden_dim] * (layer_num - 1)
    params = {"W": [], "b": [], "gamma": [], "beta": []}
    keys = jax.random.split(key, len(layers_unit))
    for idx in range(len(layers_unit) - 1):
        in_d, out_d = layers_unit[idx], layers_unit[idx + 1]
        w_pt = orthogonal(keys[idx], out_d, in_d)   # PyTorch [out, in]
        params["W"].append(w_pt.T)                   # kernel uses [in, out]
        params["b"].append(jnp.zeros((1, out_d), jnp.float32))
        if use_layernorm:
            params["gamma"].append(jnp.ones((1, out_d), jnp.float32))
            params["beta"].append(jnp.zeros((1, out_d), jnp.float32))
    w_pt = orthogonal(keys[-1], output_dim, layers_unit[-1])
    params["W_last"] = w_pt.T
    params["b_last"] = jnp.zeros((1, output_dim), jnp.float32)
    return params


# ----------------------------------------------------------------------------
# Helpers
# ----------------------------------------------------------------------------
def _round_up(x, m):
    return (x + m - 1) // m * m


def _pad2(a, rows, cols):
    return jnp.pad(a, ((0, rows - a.shape[0]), (0, cols - a.shape[1])))


# ----------------------------------------------------------------------------
# Pallas kernel: full MLP forward over one batch tile.  Hidden dims are padded
# to 128 lanes; the input / output feature dims are left at their real sizes.
# ----------------------------------------------------------------------------
def _mlp_kernel(*refs, num_hidden, use_layernorm, ln_eps, ln_inv_n,
                hidden_dim, hid_pad, matmul_dtype):
    # refs = (x_ref, [W_i, aux_i] * num_hidden, W_last, b_last, o_ref)
    # aux_i rows: [bias; gamma; beta] if use_layernorm else [bias]
    x_ref = refs[0]
    o_ref = refs[-1]
    p_refs = refs[1:-1]

    pad_lanes = use_layernorm and num_hidden > 0 and hid_pad != hidden_dim
    if pad_lanes:
        # Mask of the real feature lanes (built once, hoisted out of the loop).
        lane_mask = (jax.lax.broadcasted_iota(jnp.int32, (1, hid_pad), 1)
                     < hidden_dim)

    # First-layer MXU input: cast x straight to matmul_dtype (no f32 detour).
    h_in = x_ref[...].astype(matmul_dtype)

    p = 0
    for _ in range(num_hidden):
        w = p_refs[p][...]                              # already matmul_dtype
        aux = p_refs[p + 1][...].astype(jnp.float32)    # (1|3, hid_pad)
        b = aux[0:1, :]
        h = jnp.dot(h_in, w, preferred_element_type=jnp.float32) + b
        if use_layernorm:
            gamma = aux[1:2, :]
            beta = aux[2:3, :]
            # Two-pass LayerNorm (matches PyTorch's formula).  Padded lanes of
            # h are exactly 0 (zero-padded W/b), so dividing the lane sums by
            # the *real* feature count (ln_inv_n) gives the correct mean; the
            # lane mask zeroes the padded lanes of (h - mean) so the variance
            # is over the real lanes only.
            mean = jnp.sum(h, axis=-1, keepdims=True) * ln_inv_n
            diff = h - mean
            if pad_lanes:
                diff = jnp.where(lane_mask, diff, 0.0)
            var = jnp.sum(diff * diff, axis=-1, keepdims=True) * ln_inv_n
            # gamma/beta are zero on padded lanes -> padded lanes stay 0.
            h = diff * jax.lax.rsqrt(var + ln_eps) * gamma + beta
        h = jnp.maximum(h, 0.0)  # torch.relu (default activation_function)
        h_in = h.astype(matmul_dtype)
        p += 2

    w_last = p_refs[p][...]
    b_last = p_refs[p + 1][...].astype(jnp.float32)
    out = jnp.dot(h_in, w_last, preferred_element_type=jnp.float32) + b_last
    # last_activation is None in this config
    o_ref[...] = out.astype(o_ref.dtype)


# ----------------------------------------------------------------------------
# Wrapper: picks the batch tile, pads hidden dims to 128 lanes, builds specs.
# ----------------------------------------------------------------------------
def mlp_forward(x, params, *, use_layernorm, batch_tile=1024,
                matmul_dtype=jnp.bfloat16, ln_eps=1e-5):
    B, in_dim = x.shape
    num_hidden = len(params["W"])
    hidden_dim = params["W"][0].shape[1] if num_hidden else in_dim
    out_dim = params["W_last"].shape[1]
    hid_pad = _round_up(hidden_dim, LANE)

    # --- flatten / pad parameters once (outside the kernel).  Weights are
    # cast to the MXU input dtype here so the cast is not repeated per step.
    flat_params = []
    prev = in_dim
    for i in range(num_hidden):
        flat_params.append(
            _pad2(params["W"][i], prev, hid_pad).astype(matmul_dtype))
        rows = [params["b"][i]]
        if use_layernorm:
            rows += [params["gamma"][i], params["beta"][i]]
        aux = jnp.concatenate(rows, axis=0)              # (1|3, hidden_dim)
        flat_params.append(_pad2(aux, aux.shape[0], hid_pad))
        prev = hid_pad
    flat_params.append(
        _pad2(params["W_last"], prev, out_dim).astype(matmul_dtype))
    flat_params.append(params["b_last"].astype(jnp.float32))   # (1, out_dim)

    # --- batch tile: one grid step for small batches (the grid is a serial
    # loop on v5e/v6e), a 2-way split only when each tile still has >= 128
    # rows (so v7x's two TCs both get useful work), and a hard cap of
    # `batch_tile` rows for very large batches.
    B8 = _round_up(B, 8)
    if B8 <= 256:
        bt = B8
    elif B8 <= batch_tile:
        bt = _round_up(pl.cdiv(B8, 2), 8)
    else:
        bt = batch_tile
    B_pad = _round_up(B, bt)
    grid = (B_pad // bt,)

    # Only the batch dim is padded (cheap); feature dims stay at real size.
    x_in = x if B_pad == B else jnp.pad(x, ((0, B_pad - B), (0, 0)))

    # --- BlockSpecs: batch-tiled x / out; full-array (VMEM-resident) params.
    # Last block dims equal to the full array dims (in_dim / out_dim) are
    # legal even when < 128.
    def full_spec(arr):
        return pl.BlockSpec(arr.shape, lambda i: (0, 0))

    in_specs = [pl.BlockSpec((bt, in_dim), lambda i: (i, 0))]
    in_specs += [full_spec(a) for a in flat_params]
    out_specs = pl.BlockSpec((bt, out_dim), lambda i: (i, 0))

    kernel = functools.partial(
        _mlp_kernel,
        num_hidden=num_hidden,
        use_layernorm=use_layernorm,
        ln_eps=ln_eps,
        # NOTE: all LayerNorms in this Network share width == hidden_dim.
        ln_inv_n=1.0 / float(hidden_dim),
        hidden_dim=hidden_dim,
        hid_pad=hid_pad,
        matmul_dtype=matmul_dtype,
    )

    # --- advisory cost estimate from the padded shapes actually moved.
    dt_size = jnp.dtype(matmul_dtype).itemsize
    flops = 0
    bytes_w = 0
    prev = in_dim
    for _ in range(num_hidden):
        flops += 2 * B_pad * prev * hid_pad
        bytes_w += prev * hid_pad * dt_size
        prev = hid_pad
    flops += 2 * B_pad * prev * out_dim
    bytes_w += prev * out_dim * dt_size
    bytes_aux = (num_hidden * (3 if use_layernorm else 1) * hid_pad * 4
                 + out_dim * 4)
    bytes_accessed = (B_pad * in_dim * 4 + B_pad * out_dim * 4
                      + bytes_w + bytes_aux)
    transcendentals = B_pad * num_hidden if use_layernorm else 0
    cost = pl.CostEstimate(flops=int(flops),
                           transcendentals=int(transcendentals),
                           bytes_accessed=int(bytes_accessed))

    out = pl.pallas_call(
        kernel,
        out_shape=jax.ShapeDtypeStruct((B_pad, out_dim), x.dtype),
        grid_spec=pltpu.PrefetchScalarGridSpec(
            num_scalar_prefetch=0,
            grid=grid,
            in_specs=in_specs,
            out_specs=out_specs,
        ),
        compiler_params=pltpu.CompilerParams(
            dimension_semantics=("parallel",)),
        cost_estimate=cost,
    )(x_in, *flat_params)

    return out if B_pad == B else out[:B]


# ----------------------------------------------------------------------------
# Pure-JAX reference (mirrors Network._forward exactly) for validation.
# ----------------------------------------------------------------------------
def mlp_reference(x, params, *, use_layernorm, ln_eps=1e-5):
    h = x.astype(jnp.float32)
    for i in range(len(params["W"])):
        h = h @ params["W"][i] + params["b"][i]
        if use_layernorm:
            mean = jnp.mean(h, axis=-1, keepdims=True)
            var = jnp.mean((h - mean) ** 2, axis=-1, keepdims=True)
            h = (h - mean) / jnp.sqrt(var + ln_eps)
            h = h * params["gamma"][i] + params["beta"][i]
        h = jnp.maximum(h, 0.0)
    return h @ params["W_last"] + params["b_last"]


if __name__ == "__main__":
    # Network(layer_num=3, input_dim=16, output_dim=8, hidden_dim=32,
    #         activation_function=torch.relu, last_activation=None,
    #         use_layernorm=True)
    layer_num, input_dim, output_dim, hidden_dim = 3, 16, 8, 32
    use_layernorm = True
    batch = 16

    key = jax.random.PRNGKey(0)
    pkey, xkey = jax.random.split(key)
    params = init_network_params(pkey, layer_num, input_dim, output_dim,
                                 hidden_dim, use_layernorm)
    x = jax.random.normal(xkey, (batch, input_dim), jnp.float32)

    ref = mlp_reference(x, params, use_layernorm=use_layernorm)

    # f32 MXU inputs: tight check against the reference.
    out_f32 = mlp_forward(x, params, use_layernorm=use_layernorm,
                          matmul_dtype=jnp.float32)
    out_f32 = jax.block_until_ready(out_f32)
    assert out_f32.shape == (batch, output_dim)
    assert jnp.allclose(out_f32, ref, atol=1e-4, rtol=1e-4), \
        "f32 mismatch vs ref"

    # Default path: bf16 MXU inputs with f32 accumulation (accuracy/perf knob;
    # LN / bias / relu math stays f32).  Loose tolerance.
    out = mlp_forward(x, params, use_layernorm=use_layernorm)
    out = jax.block_until_ready(out)
    assert out.shape == (batch, output_dim)
    assert bool(jnp.all(jnp.isfinite(out)))
    assert jnp.allclose(out, ref, atol=1e-1, rtol=1e-1), "bf16 mismatch vs ref"

    print("KERNEL_OK")
</pallas_src>

<mosaic_0001>
module attributes {stable_mosaic.version = 11 : i64} {
  func.func @_mlp_kernel(%arg0: i32, %arg1: memref<16x16xf32, #tpu.memory_space<vmem>>, %arg2: memref<16x128xf32, #tpu.memory_space<vmem>>, %arg3: memref<3x128xf32, #tpu.memory_space<vmem>>, %arg4: memref<128x128xf32, #tpu.memory_space<vmem>>, %arg5: memref<3x128xf32, #tpu.memory_space<vmem>>, %arg6: memref<128x8xf32, #tpu.memory_space<vmem>>, %arg7: memref<1x8xf32, #tpu.memory_space<vmem>>, %arg8: memref<16x8xf32, #tpu.memory_space<vmem>>) attributes {dimension_semantics = [#tpu.dimension_semantics<parallel>], iteration_bounds = array<i64: 1>, scalar_prefetch = 0 : i64, scratch_operands = 0 : i64, tpu.core_type = #tpu.core_type<tc>, window_params = [{transform_indices = @transform_0, window_bounds = array<i64: 16, 16>}, {pipeline_mode = #tpu.pipeline_mode<synchronous>, transform_indices = @transform_1, window_bounds = array<i64: 16, 128>}, {pipeline_mode = #tpu.pipeline_mode<synchronous>, transform_indices = @transform_2, window_bounds = array<i64: 3, 128>}, {pipeline_mode = #tpu.pipeline_mode<synchronous>, transform_indices = @transform_3, window_bounds = array<i64: 128, 128>}, {pipeline_mode = #tpu.pipeline_mode<synchronous>, transform_indices = @transform_4, window_bounds = array<i64: 3, 128>}, {pipeline_mode = #tpu.pipeline_mode<synchronous>, transform_indices = @transform_5, window_bounds = array<i64: 128, 8>}, {pipeline_mode = #tpu.pipeline_mode<synchronous>, transform_indices = @transform_6, window_bounds = array<i64: 1, 8>}, {transform_indices = @transform_7, window_bounds = array<i64: 16, 8>}]} {
    %0 = tpu.iota {dimensions = array<i32: 1>} : vector<1x128xi32>
    %c32_i32 = arith.constant 32 : i32
    %1 = vector.broadcast %c32_i32 : i32 to vector<1x128xi32>
    %2 = arith.cmpi slt, %0, %1 : vector<1x128xi32>
    %c0 = arith.constant 0 : index
    %c0_0 = arith.constant 0 : index
    %3 = vector.load %arg1[%c0, %c0_0] : memref<16x16xf32, #tpu.memory_space<vmem>>, vector<16x16xf32>
    %c0_1 = arith.constant 0 : index
    %c0_2 = arith.constant 0 : index
    %4 = vector.load %arg2[%c0_1, %c0_2] : memref<16x128xf32, #tpu.memory_space<vmem>>, vector<16x128xf32>
    %c0_3 = arith.constant 0 : index
    %c0_4 = arith.constant 0 : index
    %5 = vector.load %arg3[%c0_3, %c0_4] : memref<3x128xf32, #tpu.memory_space<vmem>>, vector<3x128xf32>
    %6 = vector.extract_strided_slice %5 {offsets = [0, 0], sizes = [1, 128], strides = [1, 1]} : vector<3x128xf32> to vector<1x128xf32>
    %cst = arith.constant dense<0.000000e+00> : vector<16x128xf32>
    %7 = tpu.matmul %3, %4, %cst {dimension_numbers = #tpu.dot_dimension_numbers<[1], [0], [0], [1], [0, 0, 1, 1], [], []>} : vector<16x16xf32>, vector<16x128xf32>, vector<16x128xf32> -> vector<16x128xf32>
    %8 = vector.broadcast %6 : vector<1x128xf32> to vector<16x128xf32>
    %9 = arith.addf %7, %8 : vector<16x128xf32>
    %10 = vector.extract_strided_slice %5 {offsets = [1, 0], sizes = [1, 128], strides = [1, 1]} : vector<3x128xf32> to vector<1x128xf32>
    %11 = vector.extract_strided_slice %5 {offsets = [2, 0], sizes = [1, 128], strides = [1, 1]} : vector<3x128xf32> to vector<1x128xf32>
    %cst_5 = arith.constant dense<0.000000e+00> : vector<16xf32>
    %12 = vector.multi_reduction <add>, %9, %cst_5 [1] : vector<16x128xf32> to vector<16xf32>
    %13 = vector.shape_cast %12 : vector<16xf32> to vector<16x1xf32>
    %cst_6 = arith.constant 3.125000e-02 : f32
    %14 = vector.broadcast %cst_6 : f32 to vector<16x1xf32>
    %15 = arith.mulf %13, %14 : vector<16x1xf32>
    %16 = vector.broadcast %15 : vector<16x1xf32> to vector<16x128xf32>
    %17 = arith.subf %9, %16 : vector<16x128xf32>
    %cst_7 = arith.constant 0.000000e+00 : f32
    %18 = vector.shape_cast %2 : vector<1x128xi1> to vector<1x128xi1>
    %19 = vector.broadcast %18 : vector<1x128xi1> to vector<16x128xi1>
    %20 = vector.broadcast %cst_7 : f32 to vector<16x128xf32>
    %21 = arith.select %19, %17, %20 : vector<16x128xi1>, vector<16x128xf32>
    %22 = arith.mulf %21, %21 : vector<16x128xf32>
    %cst_8 = arith.constant dense<0.000000e+00> : vector<16xf32>
    %23 = vector.multi_reduction <add>, %22, %cst_8 [1] : vector<16x128xf32> to vector<16xf32>
    %24 = vector.shape_cast %23 : vector<16xf32> to vector<16x1xf32>
    %cst_9 = arith.constant 3.125000e-02 : f32
    %25 = vector.broadcast %cst_9 : f32 to vector<16x1xf32>
    %26 = arith.mulf %24, %25 : vector<16x1xf32>
    %cst_10 = arith.constant 9.99999974E-6 : f32
    %27 = vector.broadcast %cst_10 : f32 to vector<16x1xf32>
    %28 = arith.addf %26, %27 : vector<16x1xf32>
    %29 = math.rsqrt %28 : vector<16x1xf32>
    %30 = vector.broadcast %29 : vector<16x1xf32> to vector<16x128xf32>
    %31 = arith.mulf %21, %30 : vector<16x128xf32>
    %32 = vector.broadcast %10 : vector<1x128xf32> to vector<16x128xf32>
    %33 = arith.mulf %31, %32 : vector<16x128xf32>
    %34 = vector.broadcast %11 : vector<1x128xf32> to vector<16x128xf32>
    %35 = arith.addf %33, %34 : vector<16x128xf32>
    %cst_11 = arith.constant 0.000000e+00 : f32
    %36 = vector.broadcast %cst_11 : f32 to vector<16x128xf32>
    %37 = arith.maximumf %35, %36 : vector<16x128xf32>
    %c0_12 = arith.constant 0 : index
    %c0_13 = arith.constant 0 : index
    %38 = vector.load %arg4[%c0_12, %c0_13] : memref<128x128xf32, #tpu.memory_space<vmem>>, vector<128x128xf32>
    %c0_14 = arith.constant 0 : index
    %c0_15 = arith.constant 0 : index
    %39 = vector.load %arg5[%c0_14, %c0_15] : memref<3x128xf32, #tpu.memory_space<vmem>>, vector<3x128xf32>
    %40 = vector.extract_strided_slice %39 {offsets = [0, 0], sizes = [1, 128], strides = [1, 1]} : vector<3x128xf32> to vector<1x128xf32>
    %cst_16 = arith.constant dense<0.000000e+00> : vector<16x128xf32>
    %41 = tpu.matmul %37, %38, %cst_16 {dimension_numbers = #tpu.dot_dimension_numbers<[1], [0], [0], [1], [0, 0, 1, 1], [], []>} : vector<16x128xf32>, vector<128x128xf32>, vector<16x128xf32> -> vector<16x128xf32>
    %42 = vector.broadcast %40 : vector<1x128xf32> to vector<16x128xf32>
    %43 = arith.addf %41, %42 : vector<16x128xf32>
    %44 = vector.extract_strided_slice %39 {offsets = [1, 0], sizes = [1, 128], strides = [1, 1]} : vector<3x128xf32> to vector<1x128xf32>
    %45 = vector.extract_strided_slice %39 {offsets = [2, 0], sizes = [1, 128], strides = [1, 1]} : vector<3x128xf32> to vector<1x128xf32>
    %cst_17 = arith.constant dense<0.000000e+00> : vector<16xf32>
    %46 = vector.multi_reduction <add>, %43, %cst_17 [1] : vector<16x128xf32> to vector<16xf32>
    %47 = vector.shape_cast %46 : vector<16xf32> to vector<16x1xf32>
    %cst_18 = arith.constant 3.125000e-02 : f32
    %48 = vector.broadcast %cst_18 : f32 to vector<16x1xf32>
    %49 = arith.mulf %47, %48 : vector<16x1xf32>
    %50 = vector.broadcast %49 : vector<16x1xf32> to vector<16x128xf32>
    %51 = arith.subf %43, %50 : vector<16x128xf32>
    %cst_19 = arith.constant 0.000000e+00 : f32
    %52 = vector.shape_cast %2 : vector<1x128xi1> to vector<1x128xi1>
    %53 = vector.broadcast %52 : vector<1x128xi1> to vector<16x128xi1>
    %54 = vector.broadcast %cst_19 : f32 to vector<16x128xf32>
    %55 = arith.select %53, %51, %54 : vector<16x128xi1>, vector<16x128xf32>
    %56 = arith.mulf %55, %55 : vector<16x128xf32>
    %cst_20 = arith.constant dense<0.000000e+00> : vector<16xf32>
    %57 = vector.multi_reduction <add>, %56, %cst_20 [1] : vector<16x128xf32> to vector<16xf32>
    %58 = vector.shape_cast %57 : vector<16xf32> to vector<16x1xf32>
    %cst_21 = arith.constant 3.125000e-02 : f32
    %59 = vector.broadcast %cst_21 : f32 to vector<16x1xf32>
    %60 = arith.mulf %58, %59 : vector<16x1xf32>
    %cst_22 = arith.constant 9.99999974E-6 : f32
    %61 = vector.broadcast %cst_22 : f32 to vector<16x1xf32>
    %62 = arith.addf %60, %61 : vector<16x1xf32>
    %63 = math.rsqrt %62 : vector<16x1xf32>
    %64 = vector.broadcast %63 : vector<16x1xf32> to vector<16x128xf32>
    %65 = arith.mulf %55, %64 : vector<16x128xf32>
    %66 = vector.broadcast %44 : vector<1x128xf32> to vector<16x128xf32>
    %67 = arith.mulf %65, %66 : vector<16x128xf32>
    %68 = vector.broadcast %45 : vector<1x128xf32> to vector<16x128xf32>
    %69 = arith.addf %67, %68 : vector<16x128xf32>
    %cst_23 = arith.constant 0.000000e+00 : f32
    %70 = vector.broadcast %cst_23 : f32 to vector<16x128xf32>
    %71 = arith.maximumf %69, %70 : vector<16x128xf32>
    %c0_24 = arith.constant 0 : index
    %c0_25 = arith.constant 0 : index
    %72 = vector.load %arg6[%c0_24, %c0_25] : memref<128x8xf32, #tpu.memory_space<vmem>>, vector<128x8xf32>
    %c0_26 = arith.constant 0 : index
    %c0_27 = arith.constant 0 : index
    %73 = vector.load %arg7[%c0_26, %c0_27] : memref<1x8xf32, #tpu.memory_space<vmem>>, vector<1x8xf32>
    %cst_28 = arith.constant dense<0.000000e+00> : vector<16x8xf32>
    %74 = tpu.matmul %71, %72, %cst_28 {dimension_numbers = #tpu.dot_dimension_numbers<[1], [0], [0], [1], [0, 0, 1, 1], [], []>} : vector<16x128xf32>, vector<128x8xf32>, vector<16x8xf32> -> vector<16x8xf32>
    %75 = vector.broadcast %73 : vector<1x8xf32> to vector<16x8xf32>
    %76 = arith.addf %74, %75 : vector<16x8xf32>
    %c0_29 = arith.constant 0 : index
    %c0_30 = arith.constant 0 : index
    %77 = vector.load %arg8[%c0_29, %c0_30] : memref<16x8xf32, #tpu.memory_space<vmem>>, vector<16x8xf32>
    tpu.vector_store %arg8[%c0_29, %c0_30], %76 {strides = array<i32>} : memref<16x8xf32, #tpu.memory_space<vmem>>, vector<16x8xf32>,
    return
  }
  func.func @transform_0(%arg0: i32) -> (i32, i32) {
    %c0_i32 = arith.constant 0 : i32
    %c0_i32_0 = arith.constant 0 : i32
    return %arg0, %c0_i32 : i32, i32
  }
  func.func @transform_1(%arg0: i32) -> (i32, i32) {
    %c0_i32 = arith.constant 0 : i32
    %c0_i32_0 = arith.constant 0 : i32
    %c0_i32_1 = arith.constant 0 : i32
    return %c0_i32, %c0_i32_0 : i32, i32
  }
  func.func @transform_2(%arg0: i32) -> (i32, i32) {
    %c0_i32 = arith.constant 0 : i32
    %c0_i32_0 = arith.constant 0 : i32
    %c0_i32_1 = arith.constant 0 : i32
    return %c0_i32, %c0_i32_0 : i32, i32
  }
  func.func @transform_3(%arg0: i32) -> (i32, i32) {
    %c0_i32 = arith.constant 0 : i32
    %c0_i32_0 = arith.constant 0 : i32
    %c0_i32_1 = arith.constant 0 : i32
    return %c0_i32, %c0_i32_0 : i32, i32
  }
  func.func @transform_4(%arg0: i32) -> (i32, i32) {
    %c0_i32 = arith.constant 0 : i32
    %c0_i32_0 = arith.constant 0 : i32
    %c0_i32_1 = arith.constant 0 : i32
    return %c0_i32, %c0_i32_0 : i32, i32
  }
  func.func @transform_5(%arg0: i32) -> (i32, i32) {
    %c0_i32 = arith.constant 0 : i32
    %c0_i32_0 = arith.constant 0 : i32
    %c0_i32_1 = arith.constant 0 : i32
    return %c0_i32, %c0_i32_0 : i32, i32
  }
  func.func @transform_6(%arg0: i32) -> (i32, i32) {
    %c0_i32 = arith.constant 0 : i32
    %c0_i32_0 = arith.constant 0 : i32
    %c0_i32_1 = arith.constant 0 : i32
    return %c0_i32, %c0_i32_0 : i32, i32
  }
  func.func @transform_7(%arg0: i32) -> (i32, i32) {
    %c0_i32 = arith.constant 0 : i32
    %c0_i32_0 = arith.constant 0 : i32
    return %arg0, %c0_i32 : i32, i32
  }
}

</mosaic_0001>

<bundles_post_ra>
// kernel: tpu_custom_call.1
= control target key start
LH: loop header
LB: loop body
LE: loop exit
PB: predicated region body
PF: predicated region fallthrough
CT: control target
= control target key end

     0   :  { %12 = vsyncpa [#allocation3], 0  ;;  %s814_s0 = inlined_call_operand.hbm [shape: f32[16,16], index: 0, kind: input, shape index: {}]   ;;  %s815_s1 = inlined_call_operand.hbm [shape: f32[16,128], index: 1, kind: input, shape index: {}]   ;;  %s816_s2 = inlined_call_operand.vmem [shape: f32[3,128], index: 2, kind: input, shape index: {}]   ;;  %s817_s3 = inlined_call_operand.vmem [shape: f32[128,128], index: 3, kind: input, shape index: {}]   ;;  %s818_s4 = inlined_call_operand.vmem [shape: f32[3,128], index: 4, kind: input, shape index: {}]   ;;  %s819_s5 = inlined_call_operand.vmem [shape: f32[128,8], index: 5, kind: input, shape index: {}]   ;;  %s820_s6 = inlined_call_operand.vmem [shape: f32[1,8], index: 6, kind: input, shape index: {}]   ;;  %s821_s7 = inlined_call_operand.vmem [shape: f32[16,8], index: 7, kind: output, shape index: {}]  }
   0x1   :  { %13 = vsyncpa [#allocation5], 0  ;;  %s605_s24 = smov [#allocation2]  }
   0x2   :  { %s19_s25 = sshll.u32 %s605_s24, 4  ;;  %s20_s25 = int_to_ptr.vmem [resolvable:$true] %s19_s25 }
   0x3   :  { %s569_s26 = scalar_lea.vmem %s20_s25, 256  ;;  %p574_p1 = scmp.lt.s32.totalorder %s20_s25, %s20_s25 }
   0x4   :  { %p570_p0 = scmp.ne.s32.totalorder %s20_s25, %s569_s26  ;;  %p575_p2 = scmp.lt.s32.totalorder %s569_s26, %s569_s26 }
   0x6   :  { %p576_p3 = por %p575_p2, %p574_p1 }
   0x8   :  { %p577_p4 = pnand %p576_p3, %p570_p0 }
   0xa   :  { %580 = shalt.err (!%p577_p4)
}
   0xb   :  { %s606_s27 = smov 128   ;;  %s607_s28 = smov 8  }
   0xc   :  { %25 = dma.hbm_to_vmem [thread:$0]  %s814_s0, 256, %s20_s25, [#allocation3], %s606_s27, %s606_s27, %s607_s28  }
   0xd   :  { %s608_s8 = smov [#allocation4]  }
   0xe   :  { %s31_s9 = sshll.u32 %s608_s8, 4  ;;  %s32_s9 = int_to_ptr.vmem [resolvable:$true] %s31_s9 }
   0xf   :  { %s589_s10 = scalar_lea.vmem %s32_s9, 256  ;;  %p594_p6 = scmp.lt.s32.totalorder %s32_s9, %s32_s9 }
  0x10   :  { %p590_p5 = scmp.ne.s32.totalorder %s32_s9, %s589_s10  ;;  %p595_p7 = scmp.lt.s32.totalorder %s589_s10, %s589_s10 }
  0x12   :  { %p596_p8 = por %p595_p7, %p594_p6 }
  0x14   :  { %p597_p9 = pnand %p596_p8, %p590_p5 }
  0x16   :  { %600 = shalt.err (!%p597_p9)
}
  0x17   :  { %37 = dma.hbm_to_vmem [thread:$0]  %s815_s1, 256, %s32_s9, [#allocation5], %s606_s27, %s606_s27, %s607_s28  }
  0x18   :  { %601 = dma.done.wait [#allocation3], 256  }
  0x19   :  { %602 = vsyncadd [#allocation3], 4294967040 }
  0x1a   :  { %603 = dma.done.wait [#allocation5], 256  }
  0x1b   :  { %604 = vsyncadd [#allocation5], 4294967040  ;;  %vm66_vm0 = vcmask 130048   ;;  %v60_v0 = vld [vmem:[#allocation4 + $0x8] sm:$0xff]  ;;  %v59_v1 = vld [vmem:[#allocation4] sm:$0xff]  ;;  %v54_v4 = vlaneseq  ;;  %vm420_vm2 = vcmask 64512  }
  0x1c   :  { %v57_v2 = vld [vmem:[#allocation2] sm:$0xff]  ;;  %472 = vmatprep.subr.mxu0 %v60_v0  ;;  %v58_v3 = vld [vmem:[#allocation2 + $0x8] sm:$0xff]  ;;  %v203_v13 = vld [vmem:[%s817_s3 + $0x78] sm:$0xff] }
  0x1d   :  { %476 = vmatprep.mubr.msk.f32.mxu0 %vm66_vm0, %v57_v2  ;;  %473 = vmatpush3.msra.mxu0 %v60_v0  ;;  %v655_v5 = vshrl.u32 %v54_v4, 7  ;;  %v661_v7 = vld [vmem:[%s816_s2] sm:$0x7]  ;;  %v669_v14 = vand.u32 127, %v54_v4  ;;  %v202_v25 = vld [vmem:[%s817_s3 + $0x70] sm:$0xff]  ;;  %v201_v26 = vld [vmem:[%s817_s3 + $0x68] sm:$0xff] }
  0x1e   :  { %474 = vmatprep.subr.mxu0 %v59_v1  ;;  %479 = vmatprep.subr.mxu1 %v203_v13  ;;  %v200_v27 = vld [vmem:[%s817_s3 + $0x60] sm:$0xff]  ;;  %v199_v28 = vld [vmem:[%s817_s3 + $0x58] sm:$0xff]  ;;  %v198_v29 = vld [vmem:[%s817_s3 + $0x50] sm:$0xff] }
  0x1f   :  { %475 = vmatpush3.msra.mxu0 %v59_v1  ;;  %v64_v6 = vsub.s32 0, %v655_v5  ;;  %480 = vmatpush3.msra.mxu1 %v203_v13  ;;  %vm56_vm1 = vcmp.lt.s32.totalorder %v669_v14, 32  ;;  %v197_v30 = vld [vmem:[%s817_s3 + $0x48] sm:$0xff]  ;;  %v196_v31 = vld [vmem:[%s817_s3 + $0x40] sm:$0xff]  ;;  %v195_v32 = vld [vmem:[%s817_s3 + $0x38] sm:$0xff]  ;;  %v176_v46 = vsub.s32 1, %v655_v5 }
  0x20   :  { %477 = vmatmul.mubr.msk.f32.vlgmr.msra.gmra.mxu0 %vm66_vm0, %v58_v3  ;;  %481 = vmatprep.subr.mxu1 %v202_v25  ;;  %v194_v33 = vld [vmem:[%s817_s3 + $0x30] sm:$0xff]  ;;  %v193_v34 = vld [vmem:[%s817_s3 + $0x28] sm:$0xff]  ;;  %v192_v35 = vld [vmem:[%s817_s3 + $0x20] sm:$0xff]  ;;  %v182_v47 = vsub.s32 2, %v655_v5 }
  0x21   :  { %v65_v9 = vrot.slane %v661_v7, %v64_v6  ;;  %482 = vmatpush3.msra.mxu1 %v202_v25  ;;  %v191_v36 = vld [vmem:[%s817_s3 + $0x18] sm:$0xff]  ;;  %v190_v37 = vld [vmem:[%s817_s3 + $0x10] sm:$0xff]  ;;  %v189_v38 = vld [vmem:[%s817_s3 + $0x8] sm:$0xff]  ;;  %v177_v48 = vrot.slane %v661_v7, %v176_v46 }
  0x22   :  { %483 = vmatprep.subr.mxu1 %v201_v26  ;;  %v188_v39 = vld [vmem:[%s817_s3] sm:$0xff]  ;;  %v183_v51 = vrot.slane %v661_v7, %v182_v47  ;;  %v337_v2 = vld [vmem:[%s819_s5 + $0x78] sm:$0xff]  ;;  %v336_v3 = vld [vmem:[%s819_s5 + $0x70] sm:$0xff] }
  0x23   :  { %484 = vmatpush3.msra.mxu1 %v201_v26  ;;  %v742_v60 = vld [vmem:[%s818_s4] sm:$0x7]  ;;  %514 = vmatprep.subr.mxu0 %v337_v2  ;;  %v333_v14 = vld [vmem:[%s819_s5 + $0x58] sm:$0xff]  ;;  %v324_v26 = vld [vmem:[%s819_s5 + $0x10] sm:$0xff] }
  0x24   :  { %485 = vmatprep.subr.mxu1 %v200_v27  ;;  %v208_v61 = vrot.slane %v742_v60, %v64_v6  ;;  %515 = vmatpush3.msra.mxu0 %v337_v2  ;;  %v325_v25 = vld [vmem:[%s819_s5 + $0x18] sm:$0xff] }
  0x25   :  { %486 = vmatpush3.msra.mxu1 %v200_v27  ;;  %516 = vmatprep.subr.mxu0 %v336_v3  ;;  %v323_v27 = vld [vmem:[%s819_s5 + $0x8] sm:$0xff] }
  0x26   :  { %487 = vmatprep.subr.mxu1 %v199_v28  ;;  %517 = vmatpush3.msra.mxu0 %v336_v3 }
  0x27   :  { %488 = vmatpush3.msra.mxu1 %v199_v28  ;;  %v322_v28 = vld [vmem:[%s819_s5] sm:$0xff] }
  0x28   :  { %489 = vmatprep.subr.mxu1 %v198_v29 }
  0x29   :  { %490 = vmatpush3.msra.mxu1 %v198_v29 }
  0x2a   :  { %491 = vmatprep.subr.mxu1 %v197_v30 }
  0x2b   :  { %492 = vmatpush3.msra.mxu1 %v197_v30 }
  0x2c   :  { %493 = vmatprep.subr.mxu1 %v196_v31 }
  0x2d   :  { %494 = vmatpush3.msra.mxu1 %v196_v31 }
  0x2e   :  { %495 = vmatprep.subr.mxu1 %v195_v32 }
  0x2f   :  { %496 = vmatpush3.msra.mxu1 %v195_v32 }
  0x30   :  { %497 = vmatprep.subr.mxu1 %v194_v33 }
  0x31   :  { %498 = vmatpush3.msra.mxu1 %v194_v33 }
  0x32   :  { %499 = vmatprep.subr.mxu1 %v193_v34 }
  0x33   :  { %500 = vmatpush3.msra.mxu1 %v193_v34 }
  0x34   :  { %501 = vmatprep.subr.mxu1 %v192_v35 }
  0x35   :  { %502 = vmatpush3.msra.mxu1 %v192_v35  ;;  %v311_v35 = vrot.slane %v742_v60, %v176_v46  ;;  %v431_v46 = vld [vmem:[%s820_s6] ss:$0 sm:$0xff] }
  0x36   :  { %503 = vmatprep.subr.mxu1 %v191_v36 }
  0x37   :  { %504 = vmatpush3.msra.mxu1 %v191_v36 }
  0x38   :  { %505 = vmatprep.subr.mxu1 %v190_v37 }
  0x39   :  { %506 = vmatpush3.msra.mxu1 %v190_v37 }
  0x3a   :  { %507 = vmatprep.subr.mxu1 %v189_v38 }
  0x3b   :  { %508 = vmatpush3.msra.mxu1 %v189_v38 }
  0x3c   :  { %509 = vmatprep.subr.mxu1 %v188_v39 }
  0x3d   :  { %510 = vmatpush3.msra.mxu1 %v188_v39  ;;  %v317_v39 = vrot.slane %v742_v60, %v182_v47 }
  0xe0   :  { %v478_v8 = vpop.f32.mrf.mxu0 }
  0xe1   :  { %v145_v12 = vadd.f32 %v478_v8, %v65_v9 }
  0xe2   :  { %v139_v10 = vpop.f32.mrf.mxu0 }
  0xe3   :  { %v140_v11 = vadd.f32 %v139_v10, %v65_v9 }
  0xe5   :  { %148 = vadd.xlane.f32.xlu0 %v140_v11 }
  0xe9   :  { %150 = vadd.xlane.f32.xlu0 %v145_v12 }
 0x16e   :  { %v149_v15 = vpop.xlane.xlu0 %148 }
 0x16f   :  { %v152_v16 = vmul.f32 0.03125, %v149_v15 }
 0x171   :  { %v154_v17 = vsub.f32 %v140_v11, %v152_v16  ;;  %v335_v16 = vld [vmem:[%s819_s5 + $0x68] sm:$0xff] }
 0x172   :  { %v151_v18 = vpop.xlane.xlu0 %150  ;;  %518 = vmatprep.subr.mxu0 %v335_v16 }
 0x173   :  { %v153_v19 = vmul.f32 0.03125, %v151_v18  ;;  %v674_v20 = vsel %vm56_vm1, %v154_v17, 0.0  ;;  %519 = vmatpush3.msra.mxu0 %v335_v16  ;;  %v334_v17 = vld [vmem:[%s819_s5 + $0x60] sm:$0xff]  ;;  %v332_v18 = vld [vmem:[%s819_s5 + $0x50] sm:$0xff] }
 0x174   :  { %v160_v21 = vmul.f32 %v674_v20, %v674_v20  ;;  %520 = vmatprep.subr.mxu0 %v334_v17 }
 0x175   :  { %v155_v22 = vsub.f32 %v145_v12, %v153_v19  ;;  %521 = vmatpush3.msra.mxu0 %v334_v17  ;;  %v331_v19 = vld [vmem:[%s819_s5 + $0x48] sm:$0xff] }
 0x176   :  { %162 = vadd.xlane.f32.xlu1 %v160_v21  ;;  %522 = vmatprep.subr.mxu0 %v333_v14  ;;  %v329_v21 = vld [vmem:[%s819_s5 + $0x38] sm:$0xff] }
 0x177   :  { %v680_v23 = vsel %vm56_vm1, %v155_v22, 0.0  ;;  %523 = vmatpush3.msra.mxu0 %v333_v14  ;;  %v328_v22 = vld [vmem:[%s819_s5 + $0x30] sm:$0xff] }
 0x178   :  { %v161_v24 = vmul.f32 %v680_v23, %v680_v23  ;;  %524 = vmatprep.subr.mxu0 %v332_v18 }
 0x179   :  { %525 = vmatpush3.msra.mxu0 %v332_v18 }
 0x17a   :  { %164 = vadd.xlane.f32.xlu1 %v161_v24  ;;  %526 = vmatprep.subr.mxu0 %v331_v19  ;;  %v326_v24 = vld [vmem:[%s819_s5 + $0x20] sm:$0xff] }
 0x17b   :  { %527 = vmatpush3.msra.mxu0 %v331_v19 }
 0x1ff   :  { %v163_v40 = vpop.xlane.xlu1 %162 }
 0x200   :  { %v166_v41 = vmul.f32 0.03125, %v163_v40 }
 0x202   :  { %v168_v42 = vadd.f32 1e-05, %v166_v41 }
 0x203   :  { %v165_v43 = vpop.xlane.xlu1 %164 }
 0x204   :  { %553 = vrsqrt.f32 %v168_v42  ;;  %v167_v44 = vmul.f32 0.03125, %v165_v43 }
 0x206   :  { %v169_v45 = vadd.f32 1e-05, %v167_v44 }
 0x208   :  { %555 = vrsqrt.f32 %v169_v45 }
 0x211   :  { %v554_v49 = vpop.eup %553 }
 0x212   :  { %v172_v50 = vmul.f32 %v554_v49, %v674_v20  ;;  %v330_v20 = vld [vmem:[%s819_s5 + $0x40] sm:$0xff] }
 0x213   :  { %528 = vmatprep.subr.mxu0 %v330_v20 }
 0x214   :  { %v178_v52 = vmul.f32 %v177_v48, %v172_v50  ;;  %529 = vmatpush3.msra.mxu0 %v330_v20 }
 0x215   :  { %v556_v53 = vpop.eup %555  ;;  %530 = vmatprep.subr.mxu0 %v329_v21 }
 0x216   :  { %v184_v54 = vadd.f32 %v183_v51, %v178_v52  ;;  %v173_v55 = vmul.f32 %v556_v53, %v680_v23  ;;  %531 = vmatpush3.msra.mxu0 %v329_v21  ;;  %v327_v23 = vld [vmem:[%s819_s5 + $0x28] sm:$0xff] }
 0x217   :  { %532 = vmatprep.subr.mxu0 %v328_v22 }
 0x218   :  { %v186_v56 = vmax.f32 %v184_v54, 0.0  ;;  %v179_v57 = vmul.f32 %v177_v48, %v173_v55  ;;  %533 = vmatpush3.msra.mxu0 %v328_v22 }
 0x219   :  { %534 = vmatprep.subr.mxu0 %v327_v23 }
 0x21a   :  { %511 = vmatprep.mubr.f32.mxu1 %v186_v56  ;;  %v185_v58 = vadd.f32 %v183_v51, %v179_v57  ;;  %535 = vmatpush3.msra.mxu0 %v327_v23 }
 0x21b   :  { %536 = vmatprep.subr.mxu0 %v326_v24 }
 0x21c   :  { %v187_v59 = vmax.f32 %v185_v58, 0.0  ;;  %537 = vmatpush3.msra.mxu0 %v326_v24 }
 0x21d   :  { %538 = vmatprep.subr.mxu0 %v325_v25 }
 0x21e   :  { %512 = vmatmul.mubr.f32.vlgmr.msra.gmra.mxu1 %v187_v59  ;;  %539 = vmatpush3.msra.mxu0 %v325_v25 }
 0x21f   :  { %540 = vmatprep.subr.mxu0 %v324_v26 }
 0x220   :  { %541 = vmatpush3.msra.mxu0 %v324_v26 }
 0x221   :  { %542 = vmatprep.subr.mxu0 %v323_v27 }
 0x222   :  { %543 = vmatpush3.msra.mxu0 %v323_v27 }
 0x223   :  { %544 = vmatprep.subr.mxu0 %v322_v28 }
 0x224   :  { %545 = vmatpush3.msra.mxu0 %v322_v28 }
 0x2de   :  { %v513_v62 = vpop.f32.mrf.mxu1 }
 0x2df   :  { %v281_v63 = vadd.f32 %v513_v62, %v208_v61 }
 0x2e0   :  { %v275_v0 = vpop.f32.mrf.mxu1 }
 0x2e1   :  { %v276_v1 = vadd.f32 %v275_v0, %v208_v61  ;;  %286 = vadd.xlane.f32.xlu1 %v281_v63 }
 0x2e3   :  { %284 = vadd.xlane.f32.xlu0 %v276_v1 }
 0x36a   :  { %v287_v4 = vpop.xlane.xlu1 %286 }
 0x36b   :  { %v289_v6 = vmul.f32 0.03125, %v287_v4 }
 0x36c   :  { %v285_v7 = vpop.xlane.xlu0 %284 }
 0x36d   :  { %v291_v8 = vsub.f32 %v281_v63, %v289_v6  ;;  %v288_v9 = vmul.f32 0.03125, %v285_v7 }
 0x36f   :  { %v290_v10 = vsub.f32 %v276_v1, %v288_v9  ;;  %v293_v11 = vsel %vm56_vm1, %v291_v8, 0.0 }
 0x370   :  { %v295_v12 = vmul.f32 %v293_v11, %v293_v11 }
 0x371   :  { %v292_v13 = vsel %vm56_vm1, %v290_v10, 0.0 }
 0x372   :  { %298 = vadd.xlane.f32.xlu1 %v295_v12  ;;  %v294_v15 = vmul.f32 %v292_v13, %v292_v13 }
 0x374   :  { %296 = vadd.xlane.f32.xlu0 %v294_v15 }
 0x3fb   :  { %v299_v29 = vpop.xlane.xlu1 %298 }
 0x3fc   :  { %v301_v30 = vmul.f32 0.03125, %v299_v29 }
 0x3fd   :  { %v297_v31 = vpop.xlane.xlu0 %296 }
 0x3fe   :  { %v303_v32 = vadd.f32 1e-05, %v301_v30  ;;  %v300_v33 = vmul.f32 0.03125, %v297_v31 }
 0x400   :  { %557 = vrsqrt.f32 %v303_v32  ;;  %v302_v34 = vadd.f32 1e-05, %v300_v33 }
 0x402   :  { %559 = vrsqrt.f32 %v302_v34 }
 0x40d   :  { %v558_v36 = vpop.eup %557 }
 0x40e   :  { %v307_v37 = vmul.f32 %v558_v36, %v293_v11 }
 0x40f   :  { %v560_v38 = vpop.eup %559 }
 0x410   :  { %v306_v40 = vmul.f32 %v560_v38, %v292_v13  ;;  %v313_v41 = vmul.f32 %v311_v35, %v307_v37 }
 0x412   :  { %v312_v42 = vmul.f32 %v311_v35, %v306_v40  ;;  %v319_v43 = vadd.f32 %v317_v39, %v313_v41 }
 0x414   :  { %v318_v44 = vadd.f32 %v317_v39, %v312_v42  ;;  %v321_v48 = vmax.f32 %v319_v43, 0.0 }
 0x416   :  { %v320_v45 = vmax.f32 %v318_v44, 0.0 }
 0x418   :  { %546 = vmatprep.mubr.f32.mxu0 %v320_v45 }
 0x419   :  { %547 = vmatmul.mubr.f32.vlgmr.msra.gmra.mxu0 %v321_v48 }
 0x4d9   :  { %v548_v49 = vpop.f32.mrf.mxu0 }
 0x4da   :  { %v417_v50 = vadd.f32 %v548_v49, %v431_v46 }
 0x4db   :  { %v411_v51 = vpop.f32.mrf.mxu0 }
 0x4dc   :  { %422 = vst.msk [vmem:[%s821_s7 + $0x8] sm:$0xff] %vm420_vm2, %v417_v50  ;;  %v412_v5 = vadd.f32 %v431_v46, %v411_v51 }
 0x4de   :  { %421 = vst.msk [vmem:[%s821_s7] sm:$0xff] %vm420_vm2, %v412_v5 }
 0x4df   :  { %427 = vsyncpa [#allocation3], 1 }
 0x4e0   :  { %428 = vsyncpa [#allocation5], 1 }

</bundles_post_ra>
